<compile_context>
chip_gen: v5e
topology: v5e:2x2
jax: 0.10.0
libtpu: 0.0.40
codegen_flags: <defaults>
</compile_context>

<pallas_src>
import functools

import jax
import jax.numpy as jnp
from jax.experimental import pallas as pl
from jax.experimental.pallas import tpu as pltpu


def _round_up(n, m):
    return ((n + m - 1) // m) * m


def _cdiv(a, b):
    return -(-a // b)


# ----------------------------------------------------------------------------
# Pallas kernel factory: entire forward pass fused.
#   x_ref:   (TB, in_dims[0])          matmul dtype
#   w_ref:   (L, Pin, Pout)            matmul dtype, resident (packed weights)
#   t_ref:   (L, Pout)                 float32, resident (packed shifts)
#   out_ref: (TB, out_dims[-1])        out dtype (lane-dense, 128 wide)
# ----------------------------------------------------------------------------
def _make_kernel(in_dims, out_dims):
    num_layers = len(out_dims)

    def kernel(x_ref, w_ref, t_ref, out_ref):
        t_all = t_ref[...]                       # (L, Pout) f32, loaded once
        h = x_ref[...]                           # (TB, in_dims[0])
        for i in range(num_layers):
            ind, outd = in_dims[i], out_dims[i]
            w = w_ref[i, :ind, :outd]            # static, sublane-aligned slice
            t = t_all[i:i + 1, :outd]            # (1, outd) f32
            # Linear + folded BatchNorm (eval): one MXU pass, f32 accumulate.
            z = jnp.dot(h.astype(w.dtype), w,
                        preferred_element_type=jnp.float32) + t
            if i < num_layers - 1:
                # ReLU; Dropout is identity in eval mode.
                # TODO(synk): training-mode Dropout (stochastic mask) and
                # batch-statistics BatchNorm not implemented (eval forward only).
                h = jnp.maximum(z, 0.0)
            else:
                out_ref[...] = z.astype(out_ref.dtype)   # lane-dense store
    return kernel


# ----------------------------------------------------------------------------
# Parameter construction (deterministic, mirrors the PyTorch module shapes)
# ----------------------------------------------------------------------------
def init_params(key, input_size, hidden_sizes, num_classes):
    params = []
    prev = input_size
    dims = list(hidden_sizes) + [num_classes]
    for i, h in enumerate(dims):
        key, kw, kb, kg, kbeta, km, kv = jax.random.split(key, 7)
        w = jax.random.normal(kw, (h, prev), jnp.float32) * 0.1   # (out, in)
        b = jax.random.normal(kb, (h,), jnp.float32) * 0.1
        layer = {"w": w, "b": b}
        if i < len(hidden_sizes):  # hidden layers also have BatchNorm1d
            layer["gamma"] = 1.0 + 0.1 * jax.random.normal(kg, (h,), jnp.float32)
            layer["beta"] = 0.1 * jax.random.normal(kbeta, (h,), jnp.float32)
            layer["running_mean"] = 0.1 * jax.random.normal(km, (h,), jnp.float32)
            layer["running_var"] = 1.0 + 0.1 * jax.random.uniform(kv, (h,), jnp.float32)
        params.append(layer)
        prev = h
    return params


# ----------------------------------------------------------------------------
# One-time parameter preparation: fold BN, transpose, pad, pack into slabs.
# ----------------------------------------------------------------------------
def prepare_params(params, eps=1e-5, matmul_dtype=jnp.bfloat16):
    num_layers = len(params)
    input_size = int(params[0]["w"].shape[1])
    out_pads = [_round_up(int(p["w"].shape[0]), 128) for p in params]
    in_dims = [_round_up(input_size, 8)] + out_pads[:-1]
    pin = max(in_dims)
    pout = max(out_pads)

    w_all = jnp.zeros((num_layers, pin, pout), jnp.float32)
    shifts = jnp.zeros((num_layers, pout), jnp.float32)
    for i, p in enumerate(params):
        w = p["w"].T.astype(jnp.float32)             # (in, out)
        b = p["b"].astype(jnp.float32)
        if i < num_layers - 1:
            inv_std = 1.0 / jnp.sqrt(p["running_var"] + eps)
            scale = p["gamma"] * inv_std
            shift = p["beta"] - p["running_mean"] * scale
            w = w * scale[None, :]                   # fold BN scale into columns
            t = b * scale + shift                    # fold bias + BN shift
        else:
            t = b
        w_all = w_all.at[i, : w.shape[0], : w.shape[1]].set(w)
        shifts = shifts.at[i, : t.shape[0]].set(t)

    return {
        "w_all": w_all.astype(matmul_dtype),         # (L, Pin, Pout)
        "shifts": shifts,                            # (L, Pout) f32
        "in_dims": tuple(in_dims),
        "out_dims": tuple(out_pads),
        "input_size": input_size,
        "num_classes": int(params[-1]["w"].shape[0]),
    }


# ----------------------------------------------------------------------------
# Batch tile selection
# ----------------------------------------------------------------------------
def _choose_tb(B, block_batch):
    """Multiple of 8, capped at block_batch; once B is large, prefer >=2 grid
    steps (v7x megacore) with tiles a multiple of 256 (fills v6e/v7x MXU M)."""
    block_batch = max(8, _round_up(int(block_batch), 8))
    tb = min(_round_up(B, 8), block_batch)
    if B >= 512 and tb == _round_up(B, 8):
        # Would collapse to a single grid step: split roughly in half instead.
        tb = min(_round_up(_cdiv(B, 2), 256), block_batch)
    return max(tb, 8)


# ----------------------------------------------------------------------------
# Forward wrapper (jitted; parameter prep is done once outside)
# ----------------------------------------------------------------------------
@functools.partial(jax.jit, static_argnums=(3, 4, 5, 6))
def _forward_jit(x, w_all, shifts, in_dims, out_dims, num_classes, block_batch):
    B, F = x.shape
    f8 = in_dims[0]
    out_pad = out_dims[-1]
    mdtype = w_all.dtype
    out_dtype = jnp.float32 if mdtype == jnp.dtype(jnp.float32) else jnp.bfloat16
    out_itemsize = 4 if out_dtype == jnp.float32 else 2

    TB = _choose_tb(B, block_batch)
    assert TB % 8 == 0
    Bp = _round_up(B, TB)

    # Feed x (near-)natively: pad features only up to a multiple of 8 sublanes,
    # pad batch only when it doesn't divide TB, cast to matmul dtype host-side.
    if (Bp, f8) == (B, F):
        xp = x if x.dtype == mdtype else x.astype(mdtype)
    else:
        xp = jnp.zeros((Bp, f8), mdtype).at[:B, :F].set(x.astype(mdtype))

    kernel = _make_kernel(in_dims, out_dims)

    flops = 2 * Bp * sum(i * o for i, o in zip(in_dims, out_dims))
    bytes_accessed = int(xp.size) * xp.dtype.itemsize \
        + Bp * out_pad * out_itemsize \
        + int(w_all.size) * w_all.dtype.itemsize \
        + int(shifts.size) * shifts.dtype.itemsize

    out = pl.pallas_call(
        kernel,
        out_shape=jax.ShapeDtypeStruct((Bp, out_pad), out_dtype),
        grid=(Bp // TB,),
        in_specs=[
            pl.BlockSpec((TB, f8), lambda b: (b, 0)),            # batch-tiled x
            pl.BlockSpec(w_all.shape, lambda b: (0, 0, 0)),      # resident weights
            pl.BlockSpec(shifts.shape, lambda b: (0, 0)),        # resident shifts
        ],
        out_specs=pl.BlockSpec((TB, out_pad), lambda b: (b, 0)),
        compiler_params=pltpu.CompilerParams(
            dimension_semantics=("parallel",),
        ),
        cost_estimate=pl.CostEstimate(
            flops=flops, transcendentals=0, bytes_accessed=bytes_accessed),
    )(xp, w_all, shifts)

    return out[:B, :num_classes].astype(jnp.float32)


def footballnet_forward(x, prepped, *, block_batch=1024):
    assert x.shape[1] == prepped["input_size"], "feature dim mismatch with prepared params"
    return _forward_jit(x, prepped["w_all"], prepped["shifts"],
                        prepped["in_dims"], prepped["out_dims"],
                        prepped["num_classes"], int(block_batch))


# ----------------------------------------------------------------------------
# Pure-JAX reference (eval-mode PyTorch semantics) for verification
# ----------------------------------------------------------------------------
def footballnet_reference(x, params, eps=1e-5):
    h = x
    for layer in params[:-1]:
        z = h @ layer["w"].T + layer["b"]
        z = (z - layer["running_mean"]) / jnp.sqrt(layer["running_var"] + eps)
        z = z * layer["gamma"] + layer["beta"]
        h = jnp.maximum(z, 0.0)
    return h @ params[-1]["w"].T + params[-1]["b"]


if __name__ == "__main__":
    batch = 8
    input_size = 32
    hidden_sizes = [64, 64, 32, 32]
    num_classes = 3

    key = jax.random.PRNGKey(0)
    key, kx = jax.random.split(key)
    x = jax.random.normal(kx, (batch, input_size), jnp.float32)
    params = init_params(key, input_size, hidden_sizes, num_classes)

    # Precompute folded / padded / packed parameters once (outside per-call path).
    prepped_f32 = prepare_params(params, matmul_dtype=jnp.float32)
    prepped_bf16 = prepare_params(params, matmul_dtype=jnp.bfloat16)

    ref = footballnet_reference(x, params)

    out_f32 = jax.block_until_ready(footballnet_forward(x, prepped_f32))
    out_bf16 = jax.block_until_ready(footballnet_forward(x, prepped_bf16))
    assert out_f32.shape == (batch, num_classes)
    assert out_bf16.shape == (batch, num_classes)
    assert jnp.allclose(out_f32, ref, atol=1e-4, rtol=1e-4), "f32 kernel mismatch"
    assert jnp.allclose(out_bf16, ref, atol=5e-2, rtol=5e-2), "bf16 kernel mismatch"

    # Uneven batch (exercises the batch-pad path and TB rounding).
    x2 = jax.random.normal(jax.random.PRNGKey(1), (20, input_size), jnp.float32)
    out2 = jax.block_until_ready(footballnet_forward(x2, prepped_f32))
    ref2 = footballnet_reference(x2, params)
    assert out2.shape == (20, num_classes)
    assert jnp.allclose(out2, ref2, atol=1e-4, rtol=1e-4), "padded-batch mismatch"

    print("KERNEL_OK")
</pallas_src>

<mosaic_0001>
module attributes {stable_mosaic.version = 11 : i64} {
  func.func @kernel(%arg0: i32, %arg1: memref<8x32xf32, #tpu.memory_space<vmem>>, %arg2: memref<5x128x128xf32, #tpu.memory_space<vmem>>, %arg3: memref<5x128xf32, #tpu.memory_space<vmem>>, %arg4: memref<8x128xf32, #tpu.memory_space<vmem>>) attributes {dimension_semantics = [#tpu.dimension_semantics<parallel>], iteration_bounds = array<i64: 1>, scalar_prefetch = 0 : i64, scratch_operands = 0 : i64, tpu.core_type = #tpu.core_type<tc>, window_params = [{transform_indices = @transform_0, window_bounds = array<i64: 8, 32>}, {pipeline_mode = #tpu.pipeline_mode<synchronous>, transform_indices = @transform_1, window_bounds = array<i64: 5, 128, 128>}, {pipeline_mode = #tpu.pipeline_mode<synchronous>, transform_indices = @transform_2, window_bounds = array<i64: 5, 128>}, {transform_indices = @transform_3, window_bounds = array<i64: 8, 128>}]} {
    %c0 = arith.constant 0 : index
    %c0_0 = arith.constant 0 : index
    %0 = vector.load %arg3[%c0, %c0_0] : memref<5x128xf32, #tpu.memory_space<vmem>>, vector<5x128xf32>
    %c0_1 = arith.constant 0 : index
    %c0_2 = arith.constant 0 : index
    %1 = vector.load %arg1[%c0_1, %c0_2] : memref<8x32xf32, #tpu.memory_space<vmem>>, vector<8x32xf32>
    %c0_3 = arith.constant 0 : index
    %c0_4 = arith.constant 0 : index
    %c0_5 = arith.constant 0 : index
    %2 = vector.load %arg2[%c0_3, %c0_4, %c0_5] : memref<5x128x128xf32, #tpu.memory_space<vmem>>, vector<1x32x128xf32>
    %3 = vector.shape_cast %2 : vector<1x32x128xf32> to vector<32x128xf32>
    %4 = vector.extract_strided_slice %0 {offsets = [0, 0], sizes = [1, 128], strides = [1, 1]} : vector<5x128xf32> to vector<1x128xf32>
    %cst = arith.constant dense<0.000000e+00> : vector<8x128xf32>
    %5 = tpu.matmul %1, %3, %cst {dimension_numbers = #tpu.dot_dimension_numbers<[1], [0], [0], [1], [0, 0, 1, 1], [], []>} : vector<8x32xf32>, vector<32x128xf32>, vector<8x128xf32> -> vector<8x128xf32>
    %6 = vector.broadcast %4 : vector<1x128xf32> to vector<8x128xf32>
    %7 = arith.addf %5, %6 : vector<8x128xf32>
    %cst_6 = arith.constant 0.000000e+00 : f32
    %8 = vector.broadcast %cst_6 : f32 to vector<8x128xf32>
    %9 = arith.maximumf %7, %8 : vector<8x128xf32>
    %c1 = arith.constant 1 : index
    %c0_7 = arith.constant 0 : index
    %c0_8 = arith.constant 0 : index
    %10 = vector.load %arg2[%c1, %c0_7, %c0_8] : memref<5x128x128xf32, #tpu.memory_space<vmem>>, vector<1x128x128xf32>
    %11 = vector.shape_cast %10 : vector<1x128x128xf32> to vector<128x128xf32>
    %12 = vector.extract_strided_slice %0 {offsets = [1, 0], sizes = [1, 128], strides = [1, 1]} : vector<5x128xf32> to vector<1x128xf32>
    %cst_9 = arith.constant dense<0.000000e+00> : vector<8x128xf32>
    %13 = tpu.matmul %9, %11, %cst_9 {dimension_numbers = #tpu.dot_dimension_numbers<[1], [0], [0], [1], [0, 0, 1, 1], [], []>} : vector<8x128xf32>, vector<128x128xf32>, vector<8x128xf32> -> vector<8x128xf32>
    %14 = vector.broadcast %12 : vector<1x128xf32> to vector<8x128xf32>
    %15 = arith.addf %13, %14 : vector<8x128xf32>
    %cst_10 = arith.constant 0.000000e+00 : f32
    %16 = vector.broadcast %cst_10 : f32 to vector<8x128xf32>
    %17 = arith.maximumf %15, %16 : vector<8x128xf32>
    %c2 = arith.constant 2 : index
    %c0_11 = arith.constant 0 : index
    %c0_12 = arith.constant 0 : index
    %18 = vector.load %arg2[%c2, %c0_11, %c0_12] : memref<5x128x128xf32, #tpu.memory_space<vmem>>, vector<1x128x128xf32>
    %19 = vector.shape_cast %18 : vector<1x128x128xf32> to vector<128x128xf32>
    %20 = vector.extract_strided_slice %0 {offsets = [2, 0], sizes = [1, 128], strides = [1, 1]} : vector<5x128xf32> to vector<1x128xf32>
    %cst_13 = arith.constant dense<0.000000e+00> : vector<8x128xf32>
    %21 = tpu.matmul %17, %19, %cst_13 {dimension_numbers = #tpu.dot_dimension_numbers<[1], [0], [0], [1], [0, 0, 1, 1], [], []>} : vector<8x128xf32>, vector<128x128xf32>, vector<8x128xf32> -> vector<8x128xf32>
    %22 = vector.broadcast %20 : vector<1x128xf32> to vector<8x128xf32>
    %23 = arith.addf %21, %22 : vector<8x128xf32>
    %cst_14 = arith.constant 0.000000e+00 : f32
    %24 = vector.broadcast %cst_14 : f32 to vector<8x128xf32>
    %25 = arith.maximumf %23, %24 : vector<8x128xf32>
    %c3 = arith.constant 3 : index
    %c0_15 = arith.constant 0 : index
    %c0_16 = arith.constant 0 : index
    %26 = vector.load %arg2[%c3, %c0_15, %c0_16] : memref<5x128x128xf32, #tpu.memory_space<vmem>>, vector<1x128x128xf32>
    %27 = vector.shape_cast %26 : vector<1x128x128xf32> to vector<128x128xf32>
    %28 = vector.extract_strided_slice %0 {offsets = [3, 0], sizes = [1, 128], strides = [1, 1]} : vector<5x128xf32> to vector<1x128xf32>
    %cst_17 = arith.constant dense<0.000000e+00> : vector<8x128xf32>
    %29 = tpu.matmul %25, %27, %cst_17 {dimension_numbers = #tpu.dot_dimension_numbers<[1], [0], [0], [1], [0, 0, 1, 1], [], []>} : vector<8x128xf32>, vector<128x128xf32>, vector<8x128xf32> -> vector<8x128xf32>
    %30 = vector.broadcast %28 : vector<1x128xf32> to vector<8x128xf32>
    %31 = arith.addf %29, %30 : vector<8x128xf32>
    %cst_18 = arith.constant 0.000000e+00 : f32
    %32 = vector.broadcast %cst_18 : f32 to vector<8x128xf32>
    %33 = arith.maximumf %31, %32 : vector<8x128xf32>
    %c4 = arith.constant 4 : index
    %c0_19 = arith.constant 0 : index
    %c0_20 = arith.constant 0 : index
    %34 = vector.load %arg2[%c4, %c0_19, %c0_20] : memref<5x128x128xf32, #tpu.memory_space<vmem>>, vector<1x128x128xf32>
    %35 = vector.shape_cast %34 : vector<1x128x128xf32> to vector<128x128xf32>
    %36 = vector.extract_strided_slice %0 {offsets = [4, 0], sizes = [1, 128], strides = [1, 1]} : vector<5x128xf32> to vector<1x128xf32>
    %cst_21 = arith.constant dense<0.000000e+00> : vector<8x128xf32>
    %37 = tpu.matmul %33, %35, %cst_21 {dimension_numbers = #tpu.dot_dimension_numbers<[1], [0], [0], [1], [0, 0, 1, 1], [], []>} : vector<8x128xf32>, vector<128x128xf32>, vector<8x128xf32> -> vector<8x128xf32>
    %38 = vector.broadcast %36 : vector<1x128xf32> to vector<8x128xf32>
    %39 = arith.addf %37, %38 : vector<8x128xf32>
    %c0_22 = arith.constant 0 : index
    %c0_23 = arith.constant 0 : index
    %40 = vector.load %arg4[%c0_22, %c0_23] : memref<8x128xf32, #tpu.memory_space<vmem>>, vector<8x128xf32>
    tpu.vector_store %arg4[%c0_22, %c0_23], %39 {strides = array<i32>} : memref<8x128xf32, #tpu.memory_space<vmem>>, vector<8x128xf32>,
    return
  }
  func.func @transform_0(%arg0: i32) -> (i32, i32) {
    %c0_i32 = arith.constant 0 : i32
    %c0_i32_0 = arith.constant 0 : i32
    return %arg0, %c0_i32 : i32, i32
  }
  func.func @transform_1(%arg0: i32) -> (i32, i32, i32) {
    %c0_i32 = arith.constant 0 : i32
    %c0_i32_0 = arith.constant 0 : i32
    %c0_i32_1 = arith.constant 0 : i32
    %c0_i32_2 = arith.constant 0 : i32
    return %c0_i32, %c0_i32_0, %c0_i32_1 : i32, i32, i32
  }
  func.func @transform_2(%arg0: i32) -> (i32, i32) {
    %c0_i32 = arith.constant 0 : i32
    %c0_i32_0 = arith.constant 0 : i32
    %c0_i32_1 = arith.constant 0 : i32
    return %c0_i32, %c0_i32_0 : i32, i32
  }
  func.func @transform_3(%arg0: i32) -> (i32, i32) {
    %c0_i32 = arith.constant 0 : i32
    %c0_i32_0 = arith.constant 0 : i32
    return %arg0, %c0_i32 : i32, i32
  }
}

</mosaic_0001>

<bundles_post_ra>
// kernel: _forward_jit.1
= control target key start
LH: loop header
LB: loop body
LE: loop exit
PB: predicated region body
PF: predicated region fallthrough
CT: control target
= control target key end

     0   :  { %8 = vsyncpa [#allocation3], 0  ;;  %s377_s0 = inlined_call_operand.hbm [shape: f32[8,32], index: 0, kind: input, shape index: {}]   ;;  %s378_s1 = inlined_call_operand.hbm [shape: f32[5,128,128], index: 1, kind: input, shape index: {}]   ;;  %s379_s2 = inlined_call_operand.hbm [shape: f32[5,128], index: 2, kind: input, shape index: {}]   ;;  %s380_s3 = inlined_call_operand.vmem [shape: f32[8,128], index: 3, kind: output, shape index: {}]  }
   0x1   :  { %9 = vsyncpa [#allocation5], 0  ;;  %s25_s14 = sshll.u32 %s378_s1, 4  ;;  %s333_s15 = smov [#allocation4]   ;;  %s26_s14 = int_to_ptr.hbm [resolvable:$true] %s25_s14 }
   0x2   :  { %s27_s16 = sshll.u32 %s333_s15, 4  ;;  %s15_s19 = sshll.u32 %s377_s0, 4  ;;  %s28_s16 = int_to_ptr.vmem [resolvable:$true] %s27_s16  ;;  %s16_s19 = int_to_ptr.hbm [resolvable:$true] %s15_s19 }
   0x3   :  { %s334_s20 = smov 128   ;;  %s335_s21 = smov 8  }
   0x4   :  { %33 = dma.hbm_to_vmem [thread:$0]  %s26_s14, 10240, %s28_s16, [#allocation5], %s334_s20, %s334_s20, %s335_s21  }
   0x5   :  { %s336_s22 = smov [#allocation2]   ;;  %s39_s26 = sshll.u32 %s379_s2, 4  ;;  %s40_s26 = int_to_ptr.hbm [resolvable:$true] %s39_s26 }
   0x6   :  { %s17_s23 = sshll.u32 %s336_s22, 4  ;;  %s337_s1 = smov [#allocation6]   ;;  %s18_s23 = int_to_ptr.vmem [resolvable:$true] %s17_s23 }
   0x7   :  { %20 = dma.hbm_to_vmem [thread:$0]  %s16_s19, 128, %s18_s23, [#allocation3]  }
   0x8   :  { %s41_s27 = sshll.u32 %s337_s1, 4  ;;  %s42_s27 = int_to_ptr.vmem [resolvable:$true] %s41_s27 }
   0x9   :  { %44 = dma.hbm_to_vmem [thread:$0]  %s40_s26, 128, %s42_s27, [#allocation5]  }
   0xa   :  { %329 = dma.done.wait [#allocation3], 128  }
   0xb   :  { %330 = vsyncadd [#allocation3], 4294967168 }
   0xc   :  { %331 = dma.done.wait [#allocation5], 10368  }
   0xd   :  { %332 = vsyncadd [#allocation5], 4294956928  ;;  %v62_v0 = vld [vmem:[#allocation4 + $0x18] sm:$0xff]  ;;  %v61_v1 = vld [vmem:[#allocation4 + $0x10] sm:$0xff]  ;;  %vm64_vm0 = vcmask 261120  }
   0xe   :  { %80 = vmatpush.msra.mxu0 %v62_v0  ;;  %v105_v2 = vld [vmem:[#allocation4 + $0xf8] sm:$0xff]  ;;  %v60_v3 = vld [vmem:[#allocation4 + $0x8] sm:$0xff]  ;;  %v104_v4 = vld [vmem:[#allocation4 + $0xf0] sm:$0xff] }
   0xf   :  { %107 = vmatpush.msra.mxu1 %v105_v2  ;;  %v103_v5 = vld [vmem:[#allocation4 + $0xe8] sm:$0xff]  ;;  %v59_v6 = vld [vmem:[#allocation4] sm:$0xff]  ;;  %v58_v7 = vld [vmem:[#allocation2] sm:$0xff] }
  0x10   :  { %81 = vmatpush.msra.mxu0 %v61_v1  ;;  %v102_v8 = vld [vmem:[#allocation4 + $0xe0] sm:$0xff]  ;;  %v101_v9 = vld [vmem:[#allocation4 + $0xd8] sm:$0xff]  ;;  %v100_v10 = vld [vmem:[#allocation4 + $0xd0] sm:$0xff] }
  0x11   :  { %108 = vmatpush.msra.mxu1 %v104_v4  ;;  %v99_v11 = vld [vmem:[#allocation4 + $0xc8] sm:$0xff]  ;;  %v98_v12 = vld [vmem:[#allocation4 + $0xc0] sm:$0xff]  ;;  %v97_v13 = vld [vmem:[#allocation4 + $0xb8] sm:$0xff] }
  0x12   :  { %82 = vmatpush.msra.mxu0 %v60_v3  ;;  %v96_v14 = vld [vmem:[#allocation4 + $0xb0] sm:$0xff]  ;;  %v95_v15 = vld [vmem:[#allocation4 + $0xa8] sm:$0xff]  ;;  %v94_v16 = vld [vmem:[#allocation4 + $0xa0] sm:$0xff] }
  0x13   :  { %109 = vmatpush.msra.mxu1 %v103_v5  ;;  %v93_v17 = vld [vmem:[#allocation4 + $0x98] sm:$0xff]  ;;  %v92_v18 = vld [vmem:[#allocation4 + $0x90] sm:$0xff]  ;;  %v91_v19 = vld [vmem:[#allocation4 + $0x88] sm:$0xff] }
  0x14   :  { %83 = vmatpush.msra.mxu0 %v59_v6  ;;  %v90_v20 = vld [vmem:[#allocation4 + $0x80] sm:$0xff]  ;;  %v144_v21 = vld [vmem:[#allocation4 + $0x178] sm:$0xff]  ;;  %v143_v22 = vld [vmem:[#allocation4 + $0x170] sm:$0xff] }
  0x15   :  { %251 = vmatmul.msk.f32.vlgmr.msra.gmra.mxu0 %vm64_vm0, %v58_v7  ;;  %110 = vmatpush.msra.mxu1 %v102_v8  ;;  %v142_v23 = vld [vmem:[#allocation4 + $0x168] sm:$0xff]  ;;  %v141_v24 = vld [vmem:[#allocation4 + $0x160] sm:$0xff]  ;;  %v140_v25 = vld [vmem:[#allocation4 + $0x158] sm:$0xff] }
  0x16   :  { %146 = vmatpush.msra.mxu2 %v144_v21  ;;  %v139_v26 = vld [vmem:[#allocation4 + $0x150] sm:$0xff]  ;;  %v138_v27 = vld [vmem:[#allocation4 + $0x148] sm:$0xff]  ;;  %v137_v28 = vld [vmem:[#allocation4 + $0x140] sm:$0xff] }
  0x17   :  { %111 = vmatpush.msra.mxu1 %v101_v9  ;;  %v136_v29 = vld [vmem:[#allocation4 + $0x138] sm:$0xff]  ;;  %v135_v30 = vld [vmem:[#allocation4 + $0x130] sm:$0xff]  ;;  %v134_v31 = vld [vmem:[#allocation4 + $0x128] sm:$0xff] }
  0x18   :  { %147 = vmatpush.msra.mxu2 %v143_v22  ;;  %v133_v32 = vld [vmem:[#allocation4 + $0x120] sm:$0xff]  ;;  %v132_v34 = vld [vmem:[#allocation4 + $0x118] sm:$0xff]  ;;  %v131_v39 = vld [vmem:[#allocation4 + $0x110] sm:$0xff] }
  0x19   :  { %112 = vmatpush.msra.mxu1 %v100_v10  ;;  %v367_v33 = vld [vmem:[#allocation6] sm:$0x1f]  ;;  %v130_v40 = vld [vmem:[#allocation4 + $0x108] sm:$0xff]  ;;  %v183_v42 = vld [vmem:[#allocation4 + $0x1f8] sm:$0xff] }
  0x1a   :  { %148 = vmatpush.msra.mxu2 %v142_v23  ;;  %v63_v35 = vperm.slane %v367_v33, 0  ;;  %v129_v41 = vld [vmem:[#allocation4 + $0x100] sm:$0xff]  ;;  %v182_v43 = vld [vmem:[#allocation4 + $0x1f0] sm:$0xff]  ;;  %185 = vmatpush.msra.mxu3 %v183_v42  ;;  %v181_v44 = vld [vmem:[#allocation4 + $0x1e8] sm:$0xff]  ;;  %v106_v55 = vperm.slane %v367_v33, 1  ;;  %v223_v22 = vperm.slane %v367_v33, 4 }
  0x1b   :  { %113 = vmatpush.msra.mxu1 %v99_v11  ;;  %v180_v45 = vld [vmem:[#allocation4 + $0x1e0] sm:$0xff]  ;;  %v179_v46 = vld [vmem:[#allocation4 + $0x1d8] sm:$0xff]  ;;  %v178_v47 = vld [vmem:[#allocation4 + $0x1d0] sm:$0xff]  ;;  %v145_v11 = vperm.slane %v367_v33, 2 }
  0x1c   :  { %149 = vmatpush.msra.mxu2 %v141_v24  ;;  %186 = vmatpush.msra.mxu3 %v182_v43  ;;  %v177_v48 = vld [vmem:[#allocation4 + $0x1c8] sm:$0xff]  ;;  %v176_v49 = vld [vmem:[#allocation4 + $0x1c0] sm:$0xff]  ;;  %v175_v50 = vld [vmem:[#allocation4 + $0x1b8] sm:$0xff] }
  0x1d   :  { %114 = vmatpush.msra.mxu1 %v98_v12  ;;  %v174_v51 = vld [vmem:[#allocation4 + $0x1b0] sm:$0xff]  ;;  %v173_v52 = vld [vmem:[#allocation4 + $0x1a8] sm:$0xff]  ;;  %v172_v53 = vld [vmem:[#allocation4 + $0x1a0] sm:$0xff] }
  0x1e   :  { %150 = vmatpush.msra.mxu2 %v140_v25  ;;  %187 = vmatpush.msra.mxu3 %v181_v44  ;;  %v171_v54 = vld [vmem:[#allocation4 + $0x198] sm:$0xff]  ;;  %v170_v59 = vld [vmem:[#allocation4 + $0x190] sm:$0xff]  ;;  %v169_v60 = vld [vmem:[#allocation4 + $0x188] sm:$0xff] }
  0x1f   :  { %115 = vmatpush.msra.mxu1 %v97_v13  ;;  %v168_v61 = vld [vmem:[#allocation4 + $0x180] sm:$0xff]  ;;  %v222_v62 = vld [vmem:[#allocation4 + $0x278] sm:$0xff]  ;;  %v221_v63 = vld [vmem:[#allocation4 + $0x270] sm:$0xff] }
  0x20   :  { %151 = vmatpush.msra.mxu2 %v139_v26  ;;  %188 = vmatpush.msra.mxu3 %v180_v45  ;;  %v220_v0 = vld [vmem:[#allocation4 + $0x268] sm:$0xff]  ;;  %v219_v1 = vld [vmem:[#allocation4 + $0x260] sm:$0xff]  ;;  %v218_v2 = vld [vmem:[#allocation4 + $0x258] sm:$0xff] }
  0x21   :  { %116 = vmatpush.msra.mxu1 %v96_v14  ;;  %224 = vmatpush.msrb.mxu0 %v222_v62  ;;  %v217_v3 = vld [vmem:[#allocation4 + $0x250] sm:$0xff]  ;;  %v216_v4 = vld [vmem:[#allocation4 + $0x248] sm:$0xff]  ;;  %v215_v5 = vld [vmem:[#allocation4 + $0x240] sm:$0xff] }
  0x22   :  { %152 = vmatpush.msra.mxu2 %v138_v27  ;;  %189 = vmatpush.msra.mxu3 %v179_v46  ;;  %v214_v6 = vld [vmem:[#allocation4 + $0x238] sm:$0xff]  ;;  %v213_v7 = vld [vmem:[#allocation4 + $0x230] sm:$0xff]  ;;  %v212_v8 = vld [vmem:[#allocation4 + $0x228] sm:$0xff] }
  0x23   :  { %117 = vmatpush.msra.mxu1 %v95_v15  ;;  %225 = vmatpush.msrb.mxu0 %v221_v63  ;;  %v211_v9 = vld [vmem:[#allocation4 + $0x220] sm:$0xff]  ;;  %v210_v10 = vld [vmem:[#allocation4 + $0x218] sm:$0xff]  ;;  %v209_v15 = vld [vmem:[#allocation4 + $0x210] sm:$0xff] }
  0x24   :  { %153 = vmatpush.msra.mxu2 %v137_v28  ;;  %190 = vmatpush.msra.mxu3 %v178_v47 }
  0x25   :  { %118 = vmatpush.msra.mxu1 %v94_v16  ;;  %226 = vmatpush.msrb.mxu0 %v220_v0  ;;  %v208_v16 = vld [vmem:[#allocation4 + $0x208] sm:$0xff] }
  0x26   :  { %154 = vmatpush.msra.mxu2 %v136_v29  ;;  %191 = vmatpush.msra.mxu3 %v177_v48 }
  0x27   :  { %119 = vmatpush.msra.mxu1 %v93_v17  ;;  %227 = vmatpush.msrb.mxu0 %v219_v1  ;;  %v207_v17 = vld [vmem:[#allocation4 + $0x200] sm:$0xff] }
  0x28   :  { %155 = vmatpush.msra.mxu2 %v135_v30  ;;  %192 = vmatpush.msra.mxu3 %v176_v49 }
  0x29   :  { %120 = vmatpush.msra.mxu1 %v92_v18  ;;  %228 = vmatpush.msrb.mxu0 %v218_v2  ;;  %v184_v18 = vperm.slane %v367_v33, 3 }
  0x2a   :  { %156 = vmatpush.msra.mxu2 %v134_v31  ;;  %193 = vmatpush.msra.mxu3 %v175_v50 }
  0x2b   :  { %121 = vmatpush.msra.mxu1 %v91_v19  ;;  %229 = vmatpush.msrb.mxu0 %v217_v3 }
  0x2c   :  { %157 = vmatpush.msra.mxu2 %v133_v32  ;;  %194 = vmatpush.msra.mxu3 %v174_v51 }
  0x2d   :  { %122 = vmatpush.msra.mxu1 %v90_v20  ;;  %230 = vmatpush.msrb.mxu0 %v216_v4 }
  0x2e   :  { %158 = vmatpush.msra.mxu2 %v132_v34  ;;  %195 = vmatpush.msra.mxu3 %v173_v52 }
  0x2f   :  { %231 = vmatpush.msrb.mxu0 %v215_v5 }
  0x30   :  { %159 = vmatpush.msra.mxu2 %v131_v39  ;;  %196 = vmatpush.msra.mxu3 %v172_v53 }
  0x31   :  { %232 = vmatpush.msrb.mxu0 %v214_v6 }
  0x32   :  { %160 = vmatpush.msra.mxu2 %v130_v40  ;;  %197 = vmatpush.msra.mxu3 %v171_v54 }
  0x33   :  { %233 = vmatpush.msrb.mxu0 %v213_v7 }
  0x34   :  { %161 = vmatpush.msra.mxu2 %v129_v41  ;;  %198 = vmatpush.msra.mxu3 %v170_v59 }
  0x35   :  { %234 = vmatpush.msrb.mxu0 %v212_v8 }
  0x36   :  { %199 = vmatpush.msra.mxu3 %v169_v60 }
  0x37   :  { %235 = vmatpush.msrb.mxu0 %v211_v9 }
  0x38   :  { %200 = vmatpush.msra.mxu3 %v168_v61 }
  0x39   :  { %236 = vmatpush.msrb.mxu0 %v210_v10 }
  0x3b   :  { %237 = vmatpush.msrb.mxu0 %v209_v15 }
  0x3d   :  { %238 = vmatpush.msrb.mxu0 %v208_v16 }
  0x3f   :  { %239 = vmatpush.msrb.mxu0 %v207_v17 }
  0x92   :  { %v85_v36 = vpop.f32.mrf.mxu0 }
  0x93   :  { %v86_v37 = vadd.f32 %v85_v36, %v63_v35 }
  0x95   :  { %v88_v38 = vmax.f32 %v86_v37, 0.0 }
  0x97   :  { %123 = vmatmul.f32.vlgmr.msra.gmra.mxu1 %v88_v38 }
 0x114   :  { %v124_v56 = vpop.f32.mrf.mxu1 }
 0x115   :  { %v125_v57 = vadd.f32 %v124_v56, %v106_v55 }
 0x117   :  { %v127_v58 = vmax.f32 %v125_v57, 0.0 }
 0x119   :  { %162 = vmatmul.f32.vlgmr.msra.gmra.mxu2 %v127_v58 }
 0x19c   :  { %v163_v12 = vpop.f32.mrf.mxu2 }
 0x19d   :  { %v164_v13 = vadd.f32 %v163_v12, %v145_v11 }
 0x19f   :  { %v166_v14 = vmax.f32 %v164_v13, 0.0 }
 0x1a1   :  { %201 = vmatmul.f32.vlgmr.msra.gmra.mxu3 %v166_v14 }
 0x224   :  { %v202_v19 = vpop.f32.mrf.mxu3 }
 0x225   :  { %v203_v20 = vadd.f32 %v202_v19, %v184_v18 }
 0x227   :  { %v205_v21 = vmax.f32 %v203_v20, 0.0 }
 0x229   :  { %240 = vmatmul.f32.vlgmr.msrb.gmra.mxu0 %v205_v21 }
 0x2a6   :  { %v241_v23 = vpop.f32.mrf.mxu0 }
 0x2a7   :  { %v242_v24 = vadd.f32 %v241_v23, %v223_v22 }
 0x2a9   :  { %244 = vst [vmem:[%s380_s3] sm:$0xff] %v242_v24 }
 0x2aa   :  { %249 = vsyncpa [#allocation3], 1 }
 0x2ab   :  { %250 = vsyncpa [#allocation5], 1 }

</bundles_post_ra>
